<compile_context>
chip_gen: v5e
topology: v5e:2x2
jax: 0.10.0
libtpu: 0.0.40
codegen_flags: <defaults>
</compile_context>

<pallas_src>
import functools

import jax
import jax.numpy as jnp
from jax import lax
from jax.experimental import pallas as pl
from jax.experimental.pallas import tpu as pltpu

SUBLANE = 8  # vreg sublane width


def _round_up(x, m):
    return (x + m - 1) // m * m


def mlp_kernel(x_ref, w1_ref, b1_ref, w2_ref, b2_ref, w3_ref, b3_ref, o_ref, *, precision):
    cd = w1_ref.dtype  # MXU operand dtype (bf16 fast path or f32 exact path)
    # In-kernel cast of the streamed batch tile (no wrapper-side HBM pass over x).
    x = x_ref[...].astype(cd)
    # fc1 + ReLU   (MXU in `cd`, f32 accumulate; elementwise kept in f32 — v5e VPU has no bf16)
    h1 = jnp.dot(x, w1_ref[...], precision=precision, preferred_element_type=jnp.float32)
    h1 = jnp.maximum(h1 + b1_ref[...], 0.0)
    # fc2 + ReLU
    h2 = jnp.dot(h1.astype(cd), w2_ref[...], precision=precision,
                 preferred_element_type=jnp.float32)
    h2 = jnp.maximum(h2 + b2_ref[...], 0.0)
    # fc3 (no activation)
    out = jnp.dot(h2.astype(cd), w3_ref[...], precision=precision,
                  preferred_element_type=jnp.float32)
    o_ref[...] = (out + b3_ref[...]).astype(o_ref.dtype)


def final_layer_pallas(x, w1, b1, w2, b2, w3, b3, *,
                       compute_dtype=jnp.float32, block_batch=2048):
    """x: (B, input_dim); w_i stored as (in, out) (= PyTorch weight.T); b_i: (out,) or (1, out).

    Returns (B, output_dim) in float32.
    """
    B, in_dim = x.shape
    hid1 = w1.shape[1]
    hid2 = w2.shape[1]
    out_dim = w3.shape[1]

    # f32 path: force true-f32 GEMM passes on the MXU (matches PyTorch f32 forward numerics).
    precision = (lax.Precision.HIGHEST if jnp.dtype(compute_dtype) == jnp.dtype(jnp.float32)
                 else lax.Precision.DEFAULT)

    # Batch tile: large to amortize per-step overhead / DMA ramp, but split so the grid has
    # >= 2 steps whenever possible (v7x megacore shards the "parallel" axis over its 2 TCs).
    tb = min(block_batch, _round_up(B, SUBLANE))
    if pl.cdiv(B, tb) < 2 and B > SUBLANE:
        tb = _round_up(pl.cdiv(B, 2), SUBLANE)
    grid = (pl.cdiv(B, tb),)  # partial last block is fine: rows are independent, OOB writes masked

    # One-time casts of the tiny resident weights (biases stay f32 for the elementwise path).
    w1c = w1.astype(compute_dtype)
    w2c = w2.astype(compute_dtype)
    w3c = w3.astype(compute_dtype)
    b1c = b1.reshape(1, -1).astype(jnp.float32)
    b2c = b2.reshape(1, -1).astype(jnp.float32)
    b3c = b3.reshape(1, -1).astype(jnp.float32)

    resident = lambda shape: pl.BlockSpec(shape, lambda i: (0, 0))  # VMEM-resident across grid

    # Generation-aware scoped-VMEM limit: 64 MiB on v5e/v6e (128 MiB physical), 32 MiB on v7x.
    try:
        vmem_cap = int(pltpu.get_tpu_info().vmem_capacity_bytes)
    except Exception:
        vmem_cap = 64 * 1024 * 1024
    vmem_limit = min(vmem_cap // 2, 64 * 1024 * 1024)

    # Accurate (unpadded) traffic estimate: streamed x + streamed f32 output + one-time weights.
    w_itemsize = jnp.dtype(compute_dtype).itemsize
    flops = 2 * B * (in_dim * hid1 + hid1 * hid2 + hid2 * out_dim)
    bytes_accessed = (B * in_dim * x.dtype.itemsize
                      + B * out_dim * 4
                      + (in_dim * hid1 + hid1 * hid2 + hid2 * out_dim) * w_itemsize
                      + (hid1 + hid2 + out_dim) * 4)

    return pl.pallas_call(
        functools.partial(mlp_kernel, precision=precision),
        out_shape=jax.ShapeDtypeStruct((B, out_dim), jnp.float32),
        grid=grid,
        in_specs=[
            pl.BlockSpec((tb, in_dim), lambda i: (i, 0)),    # x: streamed over batch, no padding
            resident((in_dim, hid1)), resident((1, hid1)),   # fc1
            resident((hid1, hid2)), resident((1, hid2)),     # fc2
            resident((hid2, out_dim)), resident((1, out_dim)),  # fc3
        ],
        out_specs=pl.BlockSpec((tb, out_dim), lambda i: (i, 0)),  # direct, unpadded output tiles
        compiler_params=pltpu.CompilerParams(
            dimension_semantics=("parallel",),
            vmem_limit_bytes=vmem_limit,
        ),
        cost_estimate=pl.CostEstimate(
            flops=flops, bytes_accessed=bytes_accessed, transcendentals=0),
    )(x, w1c, b1c, w2c, b2c, w3c, b3c)


def init_linear_params(key, fan_in, fan_out):
    """Deterministic init mimicking PyTorch nn.Linear default: U(-1/sqrt(fan_in), 1/sqrt(fan_in))."""
    kw, kb = jax.random.split(key)
    bound = 1.0 / jnp.sqrt(fan_in)
    w = jax.random.uniform(kw, (fan_in, fan_out), jnp.float32, -bound, bound)  # stored as (in, out)
    b = jax.random.uniform(kb, (1, fan_out), jnp.float32, -bound, bound)
    return w, b


def reference_forward(x, w1, b1, w2, b2, w3, b3):
    h1 = jnp.maximum(x @ w1 + b1, 0.0)
    h2 = jnp.maximum(h1 @ w2 + b2, 0.0)
    return h2 @ w3 + b3


if __name__ == "__main__":
    batch, input_dim, hidden_dim, output_dim = 8, 32, 32, 16

    key = jax.random.PRNGKey(0)
    kx, k1, k2, k3 = jax.random.split(key, 4)

    x = jax.random.normal(kx, (batch, input_dim), jnp.float32)
    w1, b1 = init_linear_params(k1, input_dim, hidden_dim)
    w2, b2 = init_linear_params(k2, hidden_dim, hidden_dim)
    w3, b3 = init_linear_params(k3, hidden_dim, output_dim)

    ref = reference_forward(x, w1, b1, w2, b2, w3, b3)

    # Exact f32 path (Precision.HIGHEST on the MXU) — matches the PyTorch module's forward.
    out_f32 = jax.block_until_ready(
        final_layer_pallas(x, w1, b1, w2, b2, w3, b3, compute_dtype=jnp.float32))
    assert out_f32.shape == (batch, output_dim)
    assert jnp.allclose(out_f32, ref, atol=1e-5, rtol=1e-5)

    # Fast path: bf16 MXU operands, f32 accumulate/elementwise (looser tolerance vs f32 ref).
    out_bf16 = jax.block_until_ready(
        final_layer_pallas(x, w1, b1, w2, b2, w3, b3, compute_dtype=jnp.bfloat16))
    assert out_bf16.shape == (batch, output_dim)
    assert jnp.allclose(out_bf16, ref, atol=5e-2, rtol=5e-2)

    # Multi-tile streaming path with a ragged (non-divisible) batch: exercises partial blocks.
    xb = jax.random.normal(kx, (260, input_dim), jnp.float32)
    refb = reference_forward(xb, w1, b1, w2, b2, w3, b3)
    outb = jax.block_until_ready(
        final_layer_pallas(xb, w1, b1, w2, b2, w3, b3,
                           compute_dtype=jnp.float32, block_batch=128))
    assert outb.shape == (260, output_dim)
    assert jnp.allclose(outb, refb, atol=1e-5, rtol=1e-5)

    # Default large-tile path: auto-splits into >=2 grid steps for megacore sharding.
    outb2 = jax.block_until_ready(
        final_layer_pallas(xb, w1, b1, w2, b2, w3, b3, compute_dtype=jnp.float32))
    assert jnp.allclose(outb2, refb, atol=1e-5, rtol=1e-5)

    print("KERNEL_OK")
</pallas_src>

<mosaic_0001>
module attributes {stable_mosaic.version = 11 : i64} {
  func.func @mlp_kernel(%arg0: i32, %arg1: memref<8x32xf32, #tpu.memory_space<vmem>>, %arg2: memref<32x32xf32, #tpu.memory_space<vmem>>, %arg3: memref<1x32xf32, #tpu.memory_space<vmem>>, %arg4: memref<32x32xf32, #tpu.memory_space<vmem>>, %arg5: memref<1x32xf32, #tpu.memory_space<vmem>>, %arg6: memref<32x16xf32, #tpu.memory_space<vmem>>, %arg7: memref<1x16xf32, #tpu.memory_space<vmem>>, %arg8: memref<8x16xf32, #tpu.memory_space<vmem>>) attributes {dimension_semantics = [#tpu.dimension_semantics<parallel>], iteration_bounds = array<i64: 1>, scalar_prefetch = 0 : i64, scratch_operands = 0 : i64, tpu.core_type = #tpu.core_type<tc>, window_params = [{transform_indices = @transform_0, window_bounds = array<i64: 8, 32>}, {pipeline_mode = #tpu.pipeline_mode<synchronous>, transform_indices = @transform_1, window_bounds = array<i64: 32, 32>}, {pipeline_mode = #tpu.pipeline_mode<synchronous>, transform_indices = @transform_2, window_bounds = array<i64: 1, 32>}, {pipeline_mode = #tpu.pipeline_mode<synchronous>, transform_indices = @transform_3, window_bounds = array<i64: 32, 32>}, {pipeline_mode = #tpu.pipeline_mode<synchronous>, transform_indices = @transform_4, window_bounds = array<i64: 1, 32>}, {pipeline_mode = #tpu.pipeline_mode<synchronous>, transform_indices = @transform_5, window_bounds = array<i64: 32, 16>}, {pipeline_mode = #tpu.pipeline_mode<synchronous>, transform_indices = @transform_6, window_bounds = array<i64: 1, 16>}, {transform_indices = @transform_7, window_bounds = array<i64: 8, 16>}]} {
    %c0 = arith.constant 0 : index
    %c0_0 = arith.constant 0 : index
    %0 = vector.load %arg1[%c0, %c0_0] : memref<8x32xf32, #tpu.memory_space<vmem>>, vector<8x32xf32>
    %c0_1 = arith.constant 0 : index
    %c0_2 = arith.constant 0 : index
    %1 = vector.load %arg2[%c0_1, %c0_2] : memref<32x32xf32, #tpu.memory_space<vmem>>, vector<32x32xf32>
    %cst = arith.constant dense<0.000000e+00> : vector<8x32xf32>
    %2 = tpu.matmul %0, %1, %cst {dimension_numbers = #tpu.dot_dimension_numbers<[1], [0], [0], [1], [0, 0, 1, 1], [], []>, precision = #tpu.contract_precision<fp32>} : vector<8x32xf32>, vector<32x32xf32>, vector<8x32xf32> -> vector<8x32xf32>
    %c0_3 = arith.constant 0 : index
    %c0_4 = arith.constant 0 : index
    %3 = vector.load %arg3[%c0_3, %c0_4] : memref<1x32xf32, #tpu.memory_space<vmem>>, vector<1x32xf32>
    %4 = vector.broadcast %3 : vector<1x32xf32> to vector<8x32xf32>
    %5 = arith.addf %2, %4 : vector<8x32xf32>
    %cst_5 = arith.constant 0.000000e+00 : f32
    %6 = vector.broadcast %cst_5 : f32 to vector<8x32xf32>
    %7 = arith.maximumf %5, %6 : vector<8x32xf32>
    %c0_6 = arith.constant 0 : index
    %c0_7 = arith.constant 0 : index
    %8 = vector.load %arg4[%c0_6, %c0_7] : memref<32x32xf32, #tpu.memory_space<vmem>>, vector<32x32xf32>
    %cst_8 = arith.constant dense<0.000000e+00> : vector<8x32xf32>
    %9 = tpu.matmul %7, %8, %cst_8 {dimension_numbers = #tpu.dot_dimension_numbers<[1], [0], [0], [1], [0, 0, 1, 1], [], []>, precision = #tpu.contract_precision<fp32>} : vector<8x32xf32>, vector<32x32xf32>, vector<8x32xf32> -> vector<8x32xf32>
    %c0_9 = arith.constant 0 : index
    %c0_10 = arith.constant 0 : index
    %10 = vector.load %arg5[%c0_9, %c0_10] : memref<1x32xf32, #tpu.memory_space<vmem>>, vector<1x32xf32>
    %11 = vector.broadcast %10 : vector<1x32xf32> to vector<8x32xf32>
    %12 = arith.addf %9, %11 : vector<8x32xf32>
    %cst_11 = arith.constant 0.000000e+00 : f32
    %13 = vector.broadcast %cst_11 : f32 to vector<8x32xf32>
    %14 = arith.maximumf %12, %13 : vector<8x32xf32>
    %c0_12 = arith.constant 0 : index
    %c0_13 = arith.constant 0 : index
    %15 = vector.load %arg6[%c0_12, %c0_13] : memref<32x16xf32, #tpu.memory_space<vmem>>, vector<32x16xf32>
    %cst_14 = arith.constant dense<0.000000e+00> : vector<8x16xf32>
    %16 = tpu.matmul %14, %15, %cst_14 {dimension_numbers = #tpu.dot_dimension_numbers<[1], [0], [0], [1], [0, 0, 1, 1], [], []>, precision = #tpu.contract_precision<fp32>} : vector<8x32xf32>, vector<32x16xf32>, vector<8x16xf32> -> vector<8x16xf32>
    %c0_15 = arith.constant 0 : index
    %c0_16 = arith.constant 0 : index
    %17 = vector.load %arg7[%c0_15, %c0_16] : memref<1x16xf32, #tpu.memory_space<vmem>>, vector<1x16xf32>
    %18 = vector.broadcast %17 : vector<1x16xf32> to vector<8x16xf32>
    %19 = arith.addf %16, %18 : vector<8x16xf32>
    %c0_17 = arith.constant 0 : index
    %c0_18 = arith.constant 0 : index
    %20 = vector.load %arg8[%c0_17, %c0_18] : memref<8x16xf32, #tpu.memory_space<vmem>>, vector<8x16xf32>
    tpu.vector_store %arg8[%c0_17, %c0_18], %19 {strides = array<i32>} : memref<8x16xf32, #tpu.memory_space<vmem>>, vector<8x16xf32>,
    return
  }
  func.func @transform_0(%arg0: i32) -> (i32, i32) {
    %c0_i32 = arith.constant 0 : i32
    %c0_i32_0 = arith.constant 0 : i32
    return %arg0, %c0_i32 : i32, i32
  }
  func.func @transform_1(%arg0: i32) -> (i32, i32) {
    %c0_i32 = arith.constant 0 : i32
    %c0_i32_0 = arith.constant 0 : i32
    %c0_i32_1 = arith.constant 0 : i32
    return %c0_i32, %c0_i32_0 : i32, i32
  }
  func.func @transform_2(%arg0: i32) -> (i32, i32) {
    %c0_i32 = arith.constant 0 : i32
    %c0_i32_0 = arith.constant 0 : i32
    %c0_i32_1 = arith.constant 0 : i32
    return %c0_i32, %c0_i32_0 : i32, i32
  }
  func.func @transform_3(%arg0: i32) -> (i32, i32) {
    %c0_i32 = arith.constant 0 : i32
    %c0_i32_0 = arith.constant 0 : i32
    %c0_i32_1 = arith.constant 0 : i32
    return %c0_i32, %c0_i32_0 : i32, i32
  }
  func.func @transform_4(%arg0: i32) -> (i32, i32) {
    %c0_i32 = arith.constant 0 : i32
    %c0_i32_0 = arith.constant 0 : i32
    %c0_i32_1 = arith.constant 0 : i32
    return %c0_i32, %c0_i32_0 : i32, i32
  }
  func.func @transform_5(%arg0: i32) -> (i32, i32) {
    %c0_i32 = arith.constant 0 : i32
    %c0_i32_0 = arith.constant 0 : i32
    %c0_i32_1 = arith.constant 0 : i32
    return %c0_i32, %c0_i32_0 : i32, i32
  }
  func.func @transform_6(%arg0: i32) -> (i32, i32) {
    %c0_i32 = arith.constant 0 : i32
    %c0_i32_0 = arith.constant 0 : i32
    %c0_i32_1 = arith.constant 0 : i32
    return %c0_i32, %c0_i32_0 : i32, i32
  }
  func.func @transform_7(%arg0: i32) -> (i32, i32) {
    %c0_i32 = arith.constant 0 : i32
    %c0_i32_0 = arith.constant 0 : i32
    return %arg0, %c0_i32 : i32, i32
  }
}

</mosaic_0001>

<bundles_post_ra>
// kernel: tpu_custom_call.1
= control target key start
LH: loop header
LB: loop body
LE: loop exit
PB: predicated region body
PF: predicated region fallthrough
CT: control target
= control target key end

     0   :  { %12 = vsyncpa [#allocation3], 0  ;;  %s802_s0 = inlined_call_operand.vmem [shape: f32[8,32], index: 0, kind: input, shape index: {}]   ;;  %s803_s1 = inlined_call_operand.vmem [shape: f32[32,32], index: 1, kind: input, shape index: {}]   ;;  %s804_s2 = inlined_call_operand.vmem [shape: f32[1,32], index: 2, kind: input, shape index: {}]   ;;  %s805_s3 = inlined_call_operand.hbm [shape: f32[32,32], index: 3, kind: input, shape index: {}]   ;;  %s806_s4 = inlined_call_operand.vmem [shape: f32[1,32], index: 4, kind: input, shape index: {}]   ;;  %s807_s5 = inlined_call_operand.vmem [shape: f32[32,16], index: 5, kind: input, shape index: {}]   ;;  %s808_s6 = inlined_call_operand.vmem [shape: f32[1,16], index: 6, kind: input, shape index: {}]   ;;  %s809_s7 = inlined_call_operand.hbm [shape: f32[8,16], index: 7, kind: output, shape index: {}]  }
   0x1   :  { %13 = vsyncpa [#allocation4], 0  ;;  %s24_s26 = sshll.u32 %s805_s3, 4  ;;  %s713_s27 = smov [#allocation2]   ;;  %s25_s26 = int_to_ptr.hbm [resolvable:$true] %s24_s26 }
   0x2   :  { %s26_s28 = sshll.u32 %s713_s27, 4  ;;  %s714_s29 = smov 128   ;;  %s27_s28 = int_to_ptr.vmem [resolvable:$true] %s26_s28 }
   0x3   :  { %s715_s30 = smov 8  }
   0x4   :  { %32 = dma.hbm_to_vmem [thread:$0]  %s25_s26, 512, %s27_s28, [#allocation3], %s714_s29, %s714_s29, %s715_s30  }
   0x5   :  { %709 = dma.done.wait [#allocation3], 512  }
   0x6   :  { %710 = vsyncadd [#allocation3], 4294966784  ;;  %vm52_vm0 = vcmask 261120   ;;  %v47_v0 = vld [vmem:[%s803_s1 + $0x18] sm:$0xff]  ;;  %v46_v1 = vld [vmem:[%s803_s1 + $0x10] sm:$0xff]  ;;  %s716_s26 = smov [#allocation5]  }
   0x7   :  { %v45_v2 = vld [vmem:[%s803_s1 + $0x8] sm:$0xff]  ;;  %v68_v3 = vand.u32 4294901760, %v47_v0  ;;  %v70_v4 = vand.u32 4294901760, %v46_v1  ;;  %v44_v6 = vld [vmem:[%s803_s1] sm:$0xff]  ;;  %v245_v31 = vld [vmem:[#allocation2 + $0x18] sm:$0xff]  ;;  %s642_s27 = sshll.u32 %s716_s26, 4  ;;  %s643_s27 = int_to_ptr.vmem [resolvable:$true] %s642_s27 }
   0x8   :  { %v72_v5 = vand.u32 4294901760, %v45_v2  ;;  %v43_v7 = vld [vmem:[%s802_s0] sm:$0xff]  ;;  %v74_v8 = vand.u32 4294901760, %v44_v6  ;;  %v265_v32 = vand.u32 4294901760, %v245_v31  ;;  %v244_v33 = vld [vmem:[#allocation2 + $0x10] sm:$0xff]  ;;  %v243_v36 = vld [vmem:[#allocation2 + $0x8] sm:$0xff] }
   0x9   :  { %v54_v9 = vsel %vm52_vm0, %v43_v7, 0  ;;  %v98_v10 = vsub.f32 %v47_v0, %v68_v3  ;;  %69 = vmatpush.msra.mxu0 %v68_v3  ;;  %v104_v11 = vsub.f32 %v46_v1, %v70_v4  ;;  %169 = vmatpush.msra.mxu3 %v68_v3  ;;  %v267_v35 = vand.u32 4294901760, %v244_v33  ;;  %v242_v40 = vld [vmem:[#allocation2] sm:$0xff]  ;;  %s644_s30 = sshll.u32 %s809_s7, 4  ;;  %s645_s30 = int_to_ptr.hbm [resolvable:$true] %s644_s30 }
   0xa   :  { %v110_v12 = vsub.f32 %v45_v2, %v72_v5  ;;  %v76_v13 = vand.u32 4294901760, %v54_v9  ;;  %v116_v14 = vsub.f32 %v44_v6, %v74_v8  ;;  %v295_v34 = vsub.f32 %v245_v31, %v265_v32  ;;  %v658_v55 = vld [vmem:[%s804_s2] ss:$0 sm:$0xff] }
   0xb   :  { %140 = vmatpush.msra.mxu2 %v98_v10  ;;  %71 = vmatpush.msra.mxu0 %v70_v4  ;;  %v99_v15 = vand.u32 4294901760, %v98_v10  ;;  %v105_v16 = vand.u32 4294901760, %v104_v11  ;;  %v301_v38 = vsub.f32 %v244_v33, %v267_v35  ;;  %v269_v39 = vand.u32 4294901760, %v243_v36 }
   0xc   :  { %v77_v17 = vsub.f32 %v54_v9, %v76_v13  ;;  %v111_v18 = vand.u32 4294901760, %v110_v12  ;;  %171 = vmatpush.msra.mxu3 %v70_v4  ;;  %v117_v19 = vand.u32 4294901760, %v116_v14  ;;  %v296_v37 = vand.u32 4294901760, %v295_v34 }
   0xd   :  { %143 = vmatpush.msra.mxu2 %v104_v11  ;;  %v100_v20 = vsub.f32 %v98_v10, %v99_v15  ;;  %73 = vmatpush.msra.mxu0 %v72_v5  ;;  %v106_v21 = vsub.f32 %v104_v11, %v105_v16  ;;  %v302_v42 = vand.u32 4294901760, %v301_v38  ;;  %v307_v43 = vsub.f32 %v243_v36, %v269_v39  ;;  %v442_v11 = vld [vmem:[%s807_s5 + $0x18] sm:$0xff] }
   0xe   :  { %v112_v22 = vsub.f32 %v110_v12, %v111_v18  ;;  %v78_v23 = vand.u32 4294901760, %v77_v17  ;;  %173 = vmatpush.msra.mxu3 %v72_v5  ;;  %v118_v27 = vsub.f32 %v116_v14, %v117_v19  ;;  %v297_v41 = vsub.f32 %v295_v34, %v296_v37 }
   0xf   :  { %v101_v24 = vand.u32 4294901760, %v100_v20  ;;  %146 = vmatpush.msra.mxu2 %v110_v12  ;;  %v107_v25 = vand.u32 4294901760, %v106_v21  ;;  %75 = vmatpush.msra.mxu0 %v74_v8  ;;  %v271_v44 = vand.u32 4294901760, %v242_v40  ;;  %v303_v46 = vsub.f32 %v301_v38, %v302_v42  ;;  %v439_v20 = vld [vmem:[%s807_s5] sm:$0xff] }
  0x10   :  { %v79_v26 = vsub.f32 %v77_v17, %v78_v23  ;;  %175 = vmatpush.msra.mxu3 %v74_v8  ;;  %v113_v28 = vand.u32 4294901760, %v112_v22  ;;  %v119_v30 = vand.u32 4294901760, %v118_v27  ;;  %v298_v45 = vand.u32 4294901760, %v297_v41 }
  0x11   :  { %198 = vmatpush.msrb.mxu0 %v99_v15  ;;  %102 = vmatpush.msra.mxu1 %v101_v24  ;;  %v308_v47 = vand.u32 4294901760, %v307_v43  ;;  %v313_v48 = vsub.f32 %v242_v40, %v271_v44  ;;  %v304_v49 = vand.u32 4294901760, %v303_v46  ;;  %v462_v12 = vand.u32 4294901760, %v442_v11 }
  0x12   :  { %149 = vmatpush.msra.mxu2 %v116_v14  ;;  %v80_v29 = vand.u32 4294901760, %v79_v26  ;;  %179 = vmatmul.f32.vlgmr.msra.gmra.mxu3 %v78_v23  ;;  %v468_v24 = vand.u32 4294901760, %v439_v20  ;;  %vm635_vm1 = vcmask 130048  }
  0x13   :  { %152 = vmatmul.f32.vlgmr.msra.gmra.mxu2 %v77_v17  ;;  %108 = vmatpush.msra.mxu1 %v107_v25  ;;  %v309_v50 = vsub.f32 %v307_v43, %v308_v47  ;;  %v314_v51 = vand.u32 4294901760, %v313_v48  ;;  %v492_v14 = vsub.f32 %v442_v11, %v462_v12 }
  0x14   :  { %81 = vmatmul.f32.vlgmr.msra.gmra.mxu0 %v80_v29  ;;  %266 = vmatpush.msrb.mxu2 %v265_v32 }
  0x15   :  { %202 = vmatpush.msrb.mxu0 %v105_v16  ;;  %114 = vmatpush.msra.mxu1 %v113_v28  ;;  %v310_v52 = vand.u32 4294901760, %v309_v50  ;;  %v315_v53 = vsub.f32 %v313_v48, %v314_v51  ;;  %v440_v16 = vld [vmem:[%s807_s5 + $0x8] sm:$0xff]  ;;  %v493_v17 = vand.u32 4294901760, %v492_v14  ;;  %v510_v28 = vsub.f32 %v439_v20, %v468_v24 }
  0x16   :  { %268 = vmatpush.msrb.mxu2 %v267_v35  ;;  %299 = vmatpush.msrb.mxu3 %v298_v45 }
  0x17   :  { %206 = vmatpush.msrb.mxu0 %v111_v18  ;;  %120 = vmatpush.msra.mxu1 %v119_v30  ;;  %v316_v54 = vand.u32 4294901760, %v315_v53  ;;  %v494_v21 = vsub.f32 %v492_v14, %v493_v17  ;;  %v511_v31 = vand.u32 4294901760, %v510_v28 }
  0x18   :  { %122 = vmatmul.f32.vlgmr.msra.gmra.mxu1 %v76_v13  ;;  %270 = vmatpush.msrb.mxu2 %v269_v39 }
  0x19   :  { %210 = vmatpush.msrb.mxu0 %v117_v19  ;;  %229 = vmatpush.msrb.mxu1 %v68_v3  ;;  %v466_v19 = vand.u32 4294901760, %v440_v16  ;;  %v495_v25 = vand.u32 4294901760, %v494_v21  ;;  %v512_v33 = vsub.f32 %v510_v28, %v511_v31 }
  0x1a   :  { %272 = vmatpush.msrb.mxu2 %v271_v44  ;;  %305 = vmatpush.msrb.mxu3 %v304_v49 }
  0x1b   :  { %231 = vmatpush.msrb.mxu1 %v70_v4  ;;  %337 = vmatpush.msra.mxu0 %v295_v34  ;;  %v504_v23 = vsub.f32 %v440_v16, %v466_v19  ;;  %v513_v34 = vand.u32 4294901760, %v512_v33 }
  0x1c   :  { %212 = vmatmul.f32.vlgmr.msrb.gmra.mxu0 %v76_v13  ;;  %395 = vmatpush.msra.mxu2 %v296_v37 }
  0x1d   :  { %233 = vmatpush.msrb.mxu1 %v72_v5  ;;  %340 = vmatpush.msra.mxu0 %v301_v38  ;;  %v505_v27 = vand.u32 4294901760, %v504_v23 }
  0x1e   :  { %399 = vmatpush.msra.mxu2 %v302_v42  ;;  %311 = vmatpush.msrb.mxu3 %v310_v52 }
  0x1f   :  { %235 = vmatpush.msrb.mxu1 %v74_v8  ;;  %343 = vmatpush.msra.mxu0 %v307_v43  ;;  %v506_v30 = vsub.f32 %v504_v23, %v505_v27 }
  0x20   :  { %237 = vmatmul.f32.vlgmr.msrb.gmra.mxu1 %v76_v13  ;;  %403 = vmatpush.msra.mxu2 %v308_v47  ;;  %v441_v13 = vld [vmem:[%s807_s5 + $0x10] sm:$0xff] }
  0x21   :  { %366 = vmatpush.msra.mxu1 %v265_v32  ;;  %346 = vmatpush.msra.mxu0 %v313_v48  ;;  %v464_v15 = vand.u32 4294901760, %v441_v13 }
  0x22   :  { %317 = vmatpush.msrb.mxu3 %v316_v54  ;;  %407 = vmatpush.msra.mxu2 %v314_v51 }
  0x23   :  { %368 = vmatpush.msra.mxu1 %v267_v35  ;;  %463 = vmatpush.msrb.mxu0 %v462_v12  ;;  %v498_v18 = vsub.f32 %v441_v13, %v464_v15 }
  0x24   :  { %426 = vmatpush.msra.mxu3 %v265_v32  ;;  %v507_v32 = vand.u32 4294901760, %v506_v30 }
  0x25   :  { %370 = vmatpush.msra.mxu1 %v269_v39  ;;  %465 = vmatpush.msrb.mxu0 %v464_v15  ;;  %v499_v22 = vand.u32 4294901760, %v498_v18 }
  0x26   :  { %428 = vmatpush.msra.mxu3 %v267_v35  ;;  %v659_v35 = vld [vmem:[%s806_s4] ss:$0 sm:$0xff] }
  0x27   :  { %372 = vmatpush.msra.mxu1 %v271_v44  ;;  %467 = vmatpush.msrb.mxu0 %v466_v19  ;;  %v500_v26 = vsub.f32 %v498_v18, %v499_v22 }
  0x28   :  { %430 = vmatpush.msra.mxu3 %v269_v39 }
  0x29   :  { %469 = vmatpush.msrb.mxu0 %v468_v24  ;;  %496 = vmatpush.msrb.mxu1 %v495_v25  ;;  %v501_v29 = vand.u32 4294901760, %v500_v26 }
  0x2a   :  { %432 = vmatpush.msra.mxu3 %v271_v44 }
  0x2b   :  { %502 = vmatpush.msrb.mxu1 %v501_v29 }
  0x2d   :  { %508 = vmatpush.msrb.mxu1 %v507_v32 }
  0x2f   :  { %514 = vmatpush.msrb.mxu1 %v513_v34 }
  0x91   :  { %v82_v56 = vpop.f32.mrf.mxu0 }
  0x92   :  { %v83_v57 = vadd.f32 %v658_v55, %v82_v56  ;;  %v660_v55 = vld [vmem:[%s808_s6] ss:$0 sm:$0xff] }
  0x95   :  { %v123_v58 = vpop.f32.mrf.mxu1  ;;  %v180_v61 = vpop.f32.mrf.mxu3 }
  0x96   :  { %v153_v59 = vpop.f32.mrf.mxu2  ;;  %v124_v60 = vadd.f32 %v123_v58, %v83_v57 }
  0x98   :  { %v154_v62 = vadd.f32 %v153_v59, %v124_v60 }
  0x99   :  { %v213_v63 = vpop.f32.mrf.mxu0 }
  0x9a   :  { %v181_v0 = vadd.f32 %v180_v61, %v154_v62 }
  0x9c   :  { %v214_v1 = vadd.f32 %v213_v63, %v181_v0 }
  0x9d   :  { %v238_v2 = vpop.f32.mrf.mxu1 }
  0x9e   :  { %v239_v3 = vadd.f32 %v238_v2, %v214_v1 }
  0xa0   :  { %v241_v4 = vmax.f32 %v239_v3, 0.0 }
  0xa2   :  { %v251_v5 = vsel %vm52_vm0, %v241_v4, 0 }
  0xa3   :  { %v273_v6 = vand.u32 4294901760, %v251_v5 }
  0xa5   :  { %v274_v7 = vsub.f32 %v251_v5, %v273_v6  ;;  %319 = vmatmul.f32.vlgmr.msrb.gmra.mxu3 %v273_v6 }
  0xa6   :  { %563 = vmatpush.msrb.mxu3 %v462_v12 }
  0xa7   :  { %349 = vmatmul.f32.vlgmr.msra.gmra.mxu0 %v274_v7  ;;  %v275_v8 = vand.u32 4294901760, %v274_v7 }
  0xa8   :  { %565 = vmatpush.msrb.mxu3 %v464_v15  ;;  %592 = vmatpush.msra.mxu0 %v493_v17 }
  0xa9   :  { %376 = vmatmul.f32.vlgmr.msra.gmra.mxu1 %v275_v8  ;;  %v276_v9 = vsub.f32 %v274_v7, %v275_v8 }
  0xaa   :  { %567 = vmatpush.msrb.mxu3 %v466_v19  ;;  %596 = vmatpush.msra.mxu0 %v499_v22 }
  0xab   :  { %v277_v10 = vand.u32 4294901760, %v276_v9  ;;  %623 = vmatpush.msra.mxu1 %v462_v12 }
  0xac   :  { %569 = vmatpush.msrb.mxu3 %v468_v24  ;;  %600 = vmatpush.msra.mxu0 %v505_v27 }
  0xad   :  { %278 = vmatmul.f32.vlgmr.msrb.gmra.mxu2 %v277_v10  ;;  %434 = vmatmul.f32.vlgmr.msra.gmra.mxu3 %v273_v6 }
  0xae   :  { %534 = vmatpush.msrb.mxu2 %v492_v14  ;;  %604 = vmatpush.msra.mxu0 %v511_v31 }
  0xaf   :  { %625 = vmatpush.msra.mxu1 %v464_v15 }
  0xb0   :  { %537 = vmatpush.msrb.mxu2 %v498_v18 }
  0xb1   :  { %627 = vmatpush.msra.mxu1 %v466_v19 }
  0xb2   :  { %540 = vmatpush.msrb.mxu2 %v504_v23 }
  0xb3   :  { %629 = vmatpush.msra.mxu1 %v468_v24 }
  0xb4   :  { %543 = vmatpush.msrb.mxu2 %v510_v28 }
  0xb5   :  { %409 = vmatmul.f32.vlgmr.msra.gmra.mxu2 %v273_v6 }
 0x124   :  { %v350_v40 = vpop.f32.mrf.mxu0 }
 0x126   :  { %v377_v42 = vpop.f32.mrf.mxu1 }
 0x128   :  { %v320_v36 = vpop.f32.mrf.mxu3 }
 0x130   :  { %v279_v37 = vpop.f32.mrf.mxu2  ;;  %v435_v46 = vpop.f32.mrf.mxu3 }
 0x131   :  { %v280_v38 = vadd.f32 %v659_v35, %v279_v37 }
 0x133   :  { %v321_v39 = vadd.f32 %v320_v36, %v280_v38 }
 0x135   :  { %v351_v41 = vadd.f32 %v350_v40, %v321_v39 }
 0x137   :  { %v378_v43 = vadd.f32 %v377_v42, %v351_v41 }
 0x138   :  { %v410_v44 = vpop.f32.mrf.mxu2 }
 0x139   :  { %v411_v45 = vadd.f32 %v410_v44, %v378_v43 }
 0x13b   :  { %v436_v47 = vadd.f32 %v435_v46, %v411_v45 }
 0x13d   :  { %v438_v48 = vmax.f32 %v436_v47, 0.0 }
 0x13f   :  { %v448_v49 = vsel %vm52_vm0, %v438_v48, 0 }
 0x140   :  { %v470_v50 = vand.u32 4294901760, %v448_v49 }
 0x142   :  { %v471_v51 = vsub.f32 %v448_v49, %v470_v50  ;;  %516 = vmatmul.f32.vlgmr.msrb.gmra.mxu1 %v470_v50 }
 0x144   :  { %546 = vmatmul.f32.vlgmr.msrb.gmra.mxu2 %v471_v51  ;;  %v472_v52 = vand.u32 4294901760, %v471_v51 }
 0x146   :  { %573 = vmatmul.f32.vlgmr.msrb.gmra.mxu3 %v472_v52  ;;  %v473_v53 = vsub.f32 %v471_v51, %v472_v52 }
 0x148   :  { %v474_v54 = vand.u32 4294901760, %v473_v53 }
 0x14a   :  { %475 = vmatmul.f32.vlgmr.msrb.gmra.mxu0 %v474_v54  ;;  %631 = vmatmul.f32.vlgmr.msra.gmra.mxu1 %v470_v50 }
 0x152   :  { %606 = vmatmul.f32.vlgmr.msra.gmra.mxu0 %v470_v50 }
 0x1bf   :  { %v517_v56 = vpop.f32.mrf.mxu1 }
 0x1c7   :  { %v476_v57 = vpop.f32.mrf.mxu0  ;;  %v547_v60 = vpop.f32.mrf.mxu2 }
 0x1c8   :  { %v477_v58 = vadd.f32 %v660_v55, %v476_v57  ;;  %v632_v2 = vpop.f32.mrf.mxu1 }
 0x1c9   :  { %v574_v62 = vpop.f32.mrf.mxu3 }
 0x1ca   :  { %v518_v59 = vadd.f32 %v517_v56, %v477_v58 }
 0x1cc   :  { %v548_v61 = vadd.f32 %v547_v60, %v518_v59 }
 0x1ce   :  { %v575_v63 = vadd.f32 %v574_v62, %v548_v61 }
 0x1cf   :  { %v607_v0 = vpop.f32.mrf.mxu0 }
 0x1d0   :  { %v608_v1 = vadd.f32 %v607_v0, %v575_v63 }
 0x1d2   :  { %v633_v3 = vadd.f32 %v632_v2, %v608_v1 }
 0x1d4   :  { %636 = vst.msk [vmem:[#allocation5] sm:$0xff] %vm635_vm1, %v633_v3 }
 0x1d5   :  { %647 = dma.vmem_to_hbm [thread:$0]  %s643_s27, 128, %s645_s30, [#allocation4]  }
 0x1d6   :  { %711 = dma.done.wait [#allocation4], 128  }
 0x1d7   :  { %712 = vsyncadd [#allocation4], 4294967168 }
 0x1d8   :  { %652 = vsyncpa [#allocation3], 1 }
 0x1d9   :  { %653 = vsyncpa [#allocation4], 1 }

</bundles_post_ra>
